<compile_context>
chip_gen: v7x
topology: tpu7x:2x2x1
jax: 0.10.0
libtpu: 0.0.40
codegen_flags: <defaults>
</compile_context>

<pallas_src>
import functools

import jax
import jax.numpy as jnp
from jax.experimental import pallas as pl
from jax.experimental.pallas import tpu as pltpu


def _dynamics_kernel(b_ref, uT_ref, outT_ref, *, d, m):
    """out^T = B_star @ u^T via d*m unrolled VPU fused multiply-adds.

    b_ref:    (d*m,) f32 in SMEM   -- B_star, row-major flattened
    uT_ref:   (m, tile_b) f32      -- controls, lane-dense along batch
    outT_ref: (d, tile_b) f32      -- velocities, lane-dense along batch
    """
    uT = uT_ref[...]                                   # (m, tile_b)
    rows = []
    for j in range(d):                                 # static unroll, pure VPU
        acc = b_ref[j * m] * uT[0:1, :]                # SMEM scalar * vector
        for k in range(1, m):
            acc = acc + b_ref[j * m + k] * uT[k:k + 1, :]
        rows.append(acc)
    outT_ref[...] = jnp.concatenate(rows, axis=0)      # (d, tile_b), one dense store


def dynamics_forward(z, b_flat, d, m, *, tile_b=512):
    """z: (batch, d+m) f32, b_flat: (d*m,) f32 -> velocities (batch, d) f32."""
    batch, dm = z.shape
    assert dm == d + m, "z must have feature dim d + m"

    # Slice + transpose outside the kernel: free layout plumbing in XLA.
    u_t = jnp.transpose(z[:, d:].astype(jnp.float32))  # (m, batch)

    if batch <= tile_b:
        tb = batch                     # single block == full array (always legal)
        padded = batch
    else:
        tb = tile_b                    # multiple of 128 -> lane-aligned tiles
        padded = pl.cdiv(batch, tb) * tb
        if padded != batch:            # ragged last tile: zero-pad, crop after
            u_t = jnp.pad(u_t, ((0, 0), (0, padded - batch)))

    grid = (padded // tb,)
    kernel = functools.partial(_dynamics_kernel, d=d, m=m)

    out_t = pl.pallas_call(
        kernel,
        out_shape=jax.ShapeDtypeStruct((d, padded), jnp.float32),
        grid_spec=pltpu.PrefetchScalarGridSpec(
            num_scalar_prefetch=0,
            grid=grid,
            in_specs=[
                # 12 B_star scalars, whole array in SMEM (scalar slots are free).
                pl.BlockSpec(memory_space=pltpu.MemorySpace.SMEM),
                # u^T batch tile, lane-dense along batch.
                pl.BlockSpec((m, tb), lambda i: (0, i)),
            ],
            out_specs=pl.BlockSpec((d, tb), lambda i: (0, i)),
        ),
        compiler_params=pltpu.CompilerParams(
            # Batch tiles are independent -> shard across both v7x TensorCores.
            dimension_semantics=("parallel",),
        ),
    )(b_flat, u_t)

    return out_t[:, :batch].T                          # back to (batch, d)


class PallasDynamicsModel:
    """Mirror of the PyTorch Model's __init__ bookkeeping + Pallas forward."""

    def __init__(self, period, dt, B_star, d, m, evaluation=None):
        self.t_period = period / dt
        self.period = period
        self.B_star = jnp.asarray(B_star, dtype=jnp.float32)
        # Flatten once here, not per forward call.
        self._b_flat = self.B_star.reshape(-1)
        self.d, self.m = d, m
        self.evaluation = evaluation
        self.linear = False

    def forward(self, z):
        return dynamics_forward(z, self._b_flat, self.d, self.m)


if __name__ == "__main__":
    # Small, deterministic setup consistent with the module:
    # state dim d=4, control dim m=3, batch of 8 state-action pairs.
    d, m, batch = 4, 3, 8
    key = jax.random.PRNGKey(0)
    k_b, k_z, k_z2 = jax.random.split(key, 3)

    B_star = jax.random.normal(k_b, (d, m), dtype=jnp.float32)
    z = jax.random.normal(k_z, (batch, d + m), dtype=jnp.float32)

    model = PallasDynamicsModel(period=2.0, dt=0.1, B_star=B_star, d=d, m=m)

    out = jax.block_until_ready(model.forward(z))
    ref = z[:, d:] @ B_star.T
    assert out.shape == (batch, d)
    assert jnp.allclose(out, ref, atol=1e-5, rtol=1e-5), "mismatch vs reference"

    # Larger ragged batch exercises the tiled + padded "parallel" path that
    # amortizes the fixed pallas_call overhead across many state-action pairs.
    big = 1000
    z_big = jax.random.normal(k_z2, (big, d + m), dtype=jnp.float32)
    out_big = jax.block_until_ready(model.forward(z_big))
    ref_big = z_big[:, d:] @ B_star.T
    assert out_big.shape == (big, d)
    assert jnp.allclose(out_big, ref_big, atol=1e-5, rtol=1e-5), "mismatch (tiled path)"

    print("KERNEL_OK")
</pallas_src>

<mosaic_0001>
module attributes {stable_mosaic.version = 11 : i64} {
  func.func @_dynamics_kernel(%arg0: i32, %arg1: memref<12xf32, #tpu.memory_space<smem>>, %arg2: memref<3x8xf32, #tpu.memory_space<vmem>>, %arg3: memref<4x8xf32, #tpu.memory_space<vmem>>) attributes {dimension_semantics = [#tpu.dimension_semantics<parallel>], iteration_bounds = array<i64: 1>, scalar_prefetch = 0 : i64, scratch_operands = 0 : i64, tpu.core_type = #tpu.core_type<tc>, window_params = [{transform_indices = @transform_0, window_bounds = array<i64: 12>}, {transform_indices = @transform_1, window_bounds = array<i64: 3, 8>}, {transform_indices = @transform_2, window_bounds = array<i64: 4, 8>}]} {
    %c0 = arith.constant 0 : index
    %c0_0 = arith.constant 0 : index
    %0 = vector.load %arg2[%c0, %c0_0] : memref<3x8xf32, #tpu.memory_space<vmem>>, vector<3x8xf32>
    %c0_1 = arith.constant 0 : index
    %1 = memref.load %arg1[%c0_1] : memref<12xf32, #tpu.memory_space<smem>>
    %2 = vector.extract_strided_slice %0 {offsets = [0, 0], sizes = [1, 8], strides = [1, 1]} : vector<3x8xf32> to vector<1x8xf32>
    %3 = vector.broadcast %1 : f32 to vector<1x8xf32>
    %4 = arith.mulf %3, %2 : vector<1x8xf32>
    %c1 = arith.constant 1 : index
    %5 = memref.load %arg1[%c1] : memref<12xf32, #tpu.memory_space<smem>>
    %6 = vector.extract_strided_slice %0 {offsets = [1, 0], sizes = [1, 8], strides = [1, 1]} : vector<3x8xf32> to vector<1x8xf32>
    %7 = vector.broadcast %5 : f32 to vector<1x8xf32>
    %8 = arith.mulf %7, %6 : vector<1x8xf32>
    %9 = arith.addf %4, %8 : vector<1x8xf32>
    %c2 = arith.constant 2 : index
    %10 = memref.load %arg1[%c2] : memref<12xf32, #tpu.memory_space<smem>>
    %11 = vector.extract_strided_slice %0 {offsets = [2, 0], sizes = [1, 8], strides = [1, 1]} : vector<3x8xf32> to vector<1x8xf32>
    %12 = vector.broadcast %10 : f32 to vector<1x8xf32>
    %13 = arith.mulf %12, %11 : vector<1x8xf32>
    %14 = arith.addf %9, %13 : vector<1x8xf32>
    %c3 = arith.constant 3 : index
    %15 = memref.load %arg1[%c3] : memref<12xf32, #tpu.memory_space<smem>>
    %16 = vector.extract_strided_slice %0 {offsets = [0, 0], sizes = [1, 8], strides = [1, 1]} : vector<3x8xf32> to vector<1x8xf32>
    %17 = vector.broadcast %15 : f32 to vector<1x8xf32>
    %18 = arith.mulf %17, %16 : vector<1x8xf32>
    %c4 = arith.constant 4 : index
    %19 = memref.load %arg1[%c4] : memref<12xf32, #tpu.memory_space<smem>>
    %20 = vector.extract_strided_slice %0 {offsets = [1, 0], sizes = [1, 8], strides = [1, 1]} : vector<3x8xf32> to vector<1x8xf32>
    %21 = vector.broadcast %19 : f32 to vector<1x8xf32>
    %22 = arith.mulf %21, %20 : vector<1x8xf32>
    %23 = arith.addf %18, %22 : vector<1x8xf32>
    %c5 = arith.constant 5 : index
    %24 = memref.load %arg1[%c5] : memref<12xf32, #tpu.memory_space<smem>>
    %25 = vector.extract_strided_slice %0 {offsets = [2, 0], sizes = [1, 8], strides = [1, 1]} : vector<3x8xf32> to vector<1x8xf32>
    %26 = vector.broadcast %24 : f32 to vector<1x8xf32>
    %27 = arith.mulf %26, %25 : vector<1x8xf32>
    %28 = arith.addf %23, %27 : vector<1x8xf32>
    %c6 = arith.constant 6 : index
    %29 = memref.load %arg1[%c6] : memref<12xf32, #tpu.memory_space<smem>>
    %30 = vector.extract_strided_slice %0 {offsets = [0, 0], sizes = [1, 8], strides = [1, 1]} : vector<3x8xf32> to vector<1x8xf32>
    %31 = vector.broadcast %29 : f32 to vector<1x8xf32>
    %32 = arith.mulf %31, %30 : vector<1x8xf32>
    %c7 = arith.constant 7 : index
    %33 = memref.load %arg1[%c7] : memref<12xf32, #tpu.memory_space<smem>>
    %34 = vector.extract_strided_slice %0 {offsets = [1, 0], sizes = [1, 8], strides = [1, 1]} : vector<3x8xf32> to vector<1x8xf32>
    %35 = vector.broadcast %33 : f32 to vector<1x8xf32>
    %36 = arith.mulf %35, %34 : vector<1x8xf32>
    %37 = arith.addf %32, %36 : vector<1x8xf32>
    %c8 = arith.constant 8 : index
    %38 = memref.load %arg1[%c8] : memref<12xf32, #tpu.memory_space<smem>>
    %39 = vector.extract_strided_slice %0 {offsets = [2, 0], sizes = [1, 8], strides = [1, 1]} : vector<3x8xf32> to vector<1x8xf32>
    %40 = vector.broadcast %38 : f32 to vector<1x8xf32>
    %41 = arith.mulf %40, %39 : vector<1x8xf32>
    %42 = arith.addf %37, %41 : vector<1x8xf32>
    %c9 = arith.constant 9 : index
    %43 = memref.load %arg1[%c9] : memref<12xf32, #tpu.memory_space<smem>>
    %44 = vector.extract_strided_slice %0 {offsets = [0, 0], sizes = [1, 8], strides = [1, 1]} : vector<3x8xf32> to vector<1x8xf32>
    %45 = vector.broadcast %43 : f32 to vector<1x8xf32>
    %46 = arith.mulf %45, %44 : vector<1x8xf32>
    %c10 = arith.constant 10 : index
    %47 = memref.load %arg1[%c10] : memref<12xf32, #tpu.memory_space<smem>>
    %48 = vector.extract_strided_slice %0 {offsets = [1, 0], sizes = [1, 8], strides = [1, 1]} : vector<3x8xf32> to vector<1x8xf32>
    %49 = vector.broadcast %47 : f32 to vector<1x8xf32>
    %50 = arith.mulf %49, %48 : vector<1x8xf32>
    %51 = arith.addf %46, %50 : vector<1x8xf32>
    %c11 = arith.constant 11 : index
    %52 = memref.load %arg1[%c11] : memref<12xf32, #tpu.memory_space<smem>>
    %53 = vector.extract_strided_slice %0 {offsets = [2, 0], sizes = [1, 8], strides = [1, 1]} : vector<3x8xf32> to vector<1x8xf32>
    %54 = vector.broadcast %52 : f32 to vector<1x8xf32>
    %55 = arith.mulf %54, %53 : vector<1x8xf32>
    %56 = arith.addf %51, %55 : vector<1x8xf32>
    %57 = tpu.concatenate %14, %28, %42, %56 in 0 : vector<1x8xf32>, vector<1x8xf32>, vector<1x8xf32>, vector<1x8xf32> -> vector<4x8xf32>
    %c0_2 = arith.constant 0 : index
    %c0_3 = arith.constant 0 : index
    %58 = vector.load %arg3[%c0_2, %c0_3] : memref<4x8xf32, #tpu.memory_space<vmem>>, vector<4x8xf32>
    tpu.vector_store %arg3[%c0_2, %c0_3], %57 {strides = array<i32>} : memref<4x8xf32, #tpu.memory_space<vmem>>, vector<4x8xf32>,
    return
  }
  func.func @transform_0(%arg0: i32) -> i32 {
    %c0_i32 = arith.constant 0 : i32
    %c0_i32_0 = arith.constant 0 : i32
    return %c0_i32 : i32
  }
  func.func @transform_1(%arg0: i32) -> (i32, i32) {
    %c0_i32 = arith.constant 0 : i32
    %c0_i32_0 = arith.constant 0 : i32
    return %c0_i32, %arg0 : i32, i32
  }
  func.func @transform_2(%arg0: i32) -> (i32, i32) {
    %c0_i32 = arith.constant 0 : i32
    %c0_i32_0 = arith.constant 0 : i32
    return %c0_i32, %arg0 : i32, i32
  }
}

</mosaic_0001>

<bundles_post_ra>
// kernel: tpu_custom_call.1
= control target key start
LH: loop header
LB: loop body
LE: loop exit
PB: predicated region body
PF: predicated region fallthrough
CT: control target
= control target key end

     0   :  { %7 = vsyncpa [#allocation5], 0  ;;  %s274_s0 = inlined_call_operand.hbm [shape: f32[12], index: 0, kind: input, shape index: {}]   ;;  %s275_s1 = inlined_call_operand.hbm [shape: f32[3,8], index: 1, kind: input, shape index: {}]   ;;  %s276_s2 = inlined_call_operand.hbm [shape: f32[4,8], index: 2, kind: output, shape index: {}]  }
   0x1   :  { %8 = vsyncpa [#allocation3], 0 }
   0x2   :  { %9 = vsyncpa [#allocation4], 0  ;;  %s151_s11 = scalar_lea.hbm %s274_s0, 16 }
   0x3   :  { %p152_p0 = scmp.ne.s32.totalorder %s274_s0, %s151_s11  ;;  %p155_p1 = scmp.lt.u32.totalorder %s151_s11, %s274_s0 }
   0x5   :  { %p157_p2 = pnand %p155_p1, %p152_p0 }
   0x7   :  { %160 = shalt.err (!%p157_p2)
}
   0x8   :  { %s211_s16 = smov [#allocation2]   ;;  %s212_s19 = smov [#allocation6]  }
   0x9   :  { %17 = dma.hbm_to_smem %s274_s0, 16, %s211_s16, [#allocation5]  }
   0xa   :  { %s24_s20 = sshll.u32 %s212_s19, 4  ;;  %s161_s23 = scalar_lea.hbm %s275_s1, 64  ;;  %s25_s20 = int_to_ptr.vmem [resolvable:$true] %s24_s20 }
   0xb   :  { %p162_p3 = scmp.ne.s32.totalorder %s275_s1, %s161_s23  ;;  %p165_p4 = scmp.lt.u32.totalorder %s161_s23, %s275_s1 }
   0xd   :  { %p167_p5 = pnand %p165_p4, %p162_p3 }
   0xf   :  { %170 = shalt.err (!%p167_p5)
}
  0x10   :  { %s171_s28 = scalar_lea.vmem %s25_s20, 64  ;;  %p176_p7 = scmp.lt.s32.totalorder %s25_s20, %s25_s20 }
  0x11   :  { %p172_p6 = scmp.ne.s32.totalorder %s25_s20, %s171_s28  ;;  %p177_p8 = scmp.lt.s32.totalorder %s171_s28, %s171_s28 }
  0x13   :  { %p178_p9 = por %p177_p8, %p176_p7 }
  0x15   :  { %p179_p10 = pnand %p178_p9, %p172_p6 }
  0x17   :  { %182 = shalt.err (!%p179_p10)
}
  0x18   :  { %27 = dma.hbm_to_vmem [thread:$0]  %s275_s1, 64, %s25_s20, [#allocation3]  }
  0x19   :  { %205 = dma.done.wait [#allocation5], 16  }
  0x1a   :  { %206 = vsyncadd [#allocation5], 4294967280 }
  0x1b   :  { %207 = dma.done.wait [#allocation3], 64  }
  0x1c   :  { %208 = vsyncadd [#allocation3], 4294967232 }
  0x1d   :  { %34 = sfence }
  0x1e   :  { %s36_s30 = sld [smem:[#allocation2]]  ;;  %s137_s3 = sld [smem:[#allocation2 + $0x1]]  ;;  %v35_v0 = vld [vmem:[#allocation6] sm:$0x7]  ;;  %vm113_vm0 = vcmask 1040384   ;;  %vm115_vm1 = vcmask 1041408  }
  0x1f   :  { %s138_s4 = sld [smem:[#allocation2 + $0x2]]  ;;  %s139_s5 = sld [smem:[#allocation2 + $0x3]]  ;;  %vm117_vm2 = vcmask 1042432   ;;  %vm119_vm3 = vcmask 60416  }
  0x20   :  { %s140_s6 = sld [smem:[#allocation2 + $0x4]]  ;;  %s141_s7 = sld [smem:[#allocation2 + $0x5]] }
  0x21   :  { %s142_s8 = sld [smem:[#allocation2 + $0x6]]  ;;  %s143_s9 = sld [smem:[#allocation2 + $0x7]] }
  0x22   :  { %s144_s10 = sld [smem:[#allocation2 + $0x8]]  ;;  %s253_s11 = sld [smem:[#allocation2 + $0x9]] }
  0x23   :  { %s255_s12 = sld [smem:[#allocation2 + $0xa]]  ;;  %s257_s13 = sld [smem:[#allocation2 + $0xb]] }
  0x24   :  { %v37_v1 = vstv %s36_s30  ;;  %v40_v2 = vstv %s137_s3  ;;  %s213_s1 = smov [#allocation7]  }
  0x25   :  { %v38_v3 = vmul.f32 %v37_v1, %v35_v0  ;;  %v41_v4 = vmul.f32 %v40_v2, %v35_v0  ;;  %v47_v5 = vstv %s138_s4  ;;  %v54_v6 = vstv %s139_s5  ;;  %s127_s14 = sshll.u32 %s213_s1, 4  ;;  %s128_s14 = int_to_ptr.vmem [resolvable:$true] %s127_s14 }
  0x26   :  { %v48_v7 = vmul.f32 %v47_v5, %v35_v0  ;;  %v55_v8 = vmul.f32 %v54_v6, %v35_v0  ;;  %v57_v9 = vstv %s140_s6  ;;  %v64_v10 = vstv %s141_s7  ;;  %s183_s15 = scalar_lea.vmem %s128_s14, 64  ;;  %p188_p12 = scmp.lt.s32.totalorder %s128_s14, %s128_s14 }
  0x27   :  { %v43_v11 = vrot.slane %v41_v4, 1  ;;  %v58_v12 = vmul.f32 %v57_v9, %v35_v0  ;;  %v65_v13 = vmul.f32 %v64_v10, %v35_v0  ;;  %v71_v14 = vstv %s142_s8  ;;  %p184_p11 = scmp.ne.s32.totalorder %s128_s14, %s183_s15  ;;  %p189_p13 = scmp.lt.s32.totalorder %s183_s15, %s183_s15 }
  0x28   :  { %v50_v15 = vrot.slane %v48_v7, 2  ;;  %v72_v16 = vmul.f32 %v71_v14, %v35_v0  ;;  %v74_v17 = vstv %s143_s9  ;;  %v81_v18 = vstv %s144_s10 }
  0x29   :  { %v45_v19 = vadd.f32 %v43_v11, %v38_v3  ;;  %v60_v20 = vrot.slane %v58_v12, 1  ;;  %v67_v21 = vrot.slane %v65_v13, 2  ;;  %v75_v22 = vmul.f32 %v74_v17, %v35_v0  ;;  %p190_p0 = por %p189_p13, %p188_p12 }
  0x2a   :  { %v82_v23 = vmul.f32 %v81_v18, %v35_v0  ;;  %v88_v24 = vstv %s253_s11  ;;  %v91_v25 = vstv %s255_s12  ;;  %v98_v26 = vstv %s257_s13 }
  0x2b   :  { %v62_v27 = vadd.f32 %v60_v20, %v55_v8  ;;  %v77_v28 = vrot.slane %v75_v22, 1  ;;  %v89_v30 = vmul.f32 %v88_v24, %v35_v0  ;;  %v92_v31 = vmul.f32 %v91_v25, %v35_v0  ;;  %p191_p1 = pnand %p190_p0, %p184_p11 }
  0x2c   :  { %v84_v29 = vrot.slane %v82_v23, 2  ;;  %v99_v32 = vmul.f32 %v98_v26, %v35_v0  ;;  %v52_v33 = vadd.f32 %v50_v15, %v45_v19 }
  0x2d   :  { %v69_v34 = vadd.f32 %v67_v21, %v62_v27  ;;  %v79_v35 = vadd.f32 %v77_v28, %v72_v16  ;;  %v94_v36 = vrot.slane %v92_v31, 1 }
  0x2e   :  { %v101_v37 = vrot.slane %v99_v32, 2 }
  0x2f   :  { %v86_v38 = vadd.f32 %v84_v29, %v79_v35  ;;  %v105_v39 = vrot.slane %v69_v34, 7  ;;  %v96_v40 = vadd.f32 %v94_v36, %v89_v30 }
  0x31   :  { %v108_v41 = vrot.slane %v86_v38, 6  ;;  %v114_v42 = vsel %vm113_vm0, %v52_v33, %v105_v39  ;;  %v103_v43 = vadd.f32 %v101_v37, %v96_v40 }
  0x33   :  { %v116_v44 = vsel %vm115_vm1, %v114_v42, %v108_v41  ;;  %v111_v45 = vrot.slane %v103_v43, 5 }
  0x35   :  { %v118_v46 = vsel %vm117_vm2, %v116_v44, %v111_v45 }
  0x36   :  { %120 = vst.msk [vmem:[#allocation7] sm:$0xf] %vm119_vm3, %v118_v46 }
  0x37   :  { %194 = shalt.err (!%p191_p1)
}
  0x38   :  { %s195_s18 = scalar_lea.hbm %s276_s2, 64 }
  0x39   :  { %p196_p2 = scmp.ne.s32.totalorder %s276_s2, %s195_s18  ;;  %p199_p3 = scmp.lt.u32.totalorder %s195_s18, %s276_s2 }
  0x3b   :  { %p201_p4 = pnand %p199_p3, %p196_p2 }
  0x3d   :  { %204 = shalt.err (!%p201_p4)
}
  0x3e   :  { %130 = dma.vmem_to_hbm [thread:$0]  %s128_s14, 64, %s276_s2, [#allocation4]  }
  0x3f   :  { %209 = dma.done.wait [#allocation4], 64  }
  0x40   :  { %210 = vsyncadd [#allocation4], 4294967232 }
  0x41   :  { %134 = vsyncpa [#allocation3], 1 }
  0x42   :  { %135 = vsyncpa [#allocation4], 1 }
  0x43   :  { %136 = vsyncpa [#allocation5], 1 }

</bundles_post_ra>
